<compile_context>
chip_gen: v7x
topology: tpu7x:2x2x1
jax: 0.10.0
libtpu: 0.0.40
codegen_flags: <defaults>
</compile_context>

<pallas_src>
import jax
import jax.numpy as jnp
from jax.experimental import pallas as pl
from jax.experimental.pallas import tpu as pltpu


def _round_up(n, m):
    return ((n + m - 1) // m) * m


def net_pheno_kernel(xt_ref, at_ref, we_x_ref, we_a_ref, be_ref, wh_ref, bh_ref,
                     out_ref):
    # Batch-in-lanes: the last axis of every tile is the batch (lane) axis.
    xt = xt_ref[...]                 # (1, TB)        x^T
    at = at_ref[...]                 # (num_pcs, TB)  a^T
    we_a = we_a_ref[...]             # (units, num_pcs)

    # encoder: h^T = relu(We_x^T * x^T + We_a^T @ a^T + be^T).
    # K = num_pcs is tiny, so the contraction is unrolled VPU broadcast multiply-adds
    # (exact f32, no MXU push/pop latency on the per-tile critical path).
    h = we_x_ref[...] * xt           # (units, 1) * (1, TB) -> (units, TB)
    for k in range(at.shape[0]):     # static unroll over num_pcs
        h = h + we_a[:, k:k + 1] * at[k:k + 1, :]
    h = jnp.maximum(h + be_ref[...], 0.0)

    # fused heads (decoder + mlp); Dropout(0.1) is identity in eval mode.
    # out^T (2, TB) = Wh^T (2, units) @ h^T (units, TB) + bh^T (2, 1)
    out_ref[...] = (jnp.dot(wh_ref[...], h, preferred_element_type=jnp.float32)
                    + bh_ref[...])
    # TODO(synk): training-mode Dropout(0.1) (Bernoulli mask via pltpu.prng_*) not
    # implemented; eval-mode (identity) semantics are reproduced here.


def init_linear(key, fan_in, fan_out):
    """Deterministic init mimicking torch.nn.Linear defaults (uniform +-1/sqrt(fan_in))."""
    kw, kb = jax.random.split(key)
    bound = 1.0 / jnp.sqrt(jnp.float32(fan_in))
    # stored pre-transposed: (fan_in, fan_out)
    w = jax.random.uniform(kw, (fan_in, fan_out), jnp.float32, -bound, bound)
    b = jax.random.uniform(kb, (1, fan_out), jnp.float32, -bound, bound)
    return w, b


def make_params(key, units, num_pcs):
    k_e, k_d, k_m = jax.random.split(key, 3)
    we, be = init_linear(k_e, 1 + num_pcs, units)   # encoder.linears[0]
    wd, bd = init_linear(k_d, units, 1)             # decoder.linears[-1]
    wm, bm = init_linear(k_m, units, 1)             # mlp.linears[-1]
    return we, be, wd, bd, wm, bm


def net_pheno_auto(x, a, params, *, block_rows=32768):
    """x: (B, 1), a: (B, num_pcs) -> (prs (B,1), pheno (B,1)), all float32."""
    we, be, wd, bd, wm, bm = params
    B = x.shape[0]
    num_pcs = a.shape[1]

    # Batch-in-lanes layout: batch lives on the fast (lane) axis of every kernel operand.
    xt = x.astype(jnp.float32).T                    # (1, B)
    at = a.astype(jnp.float32).T                    # (num_pcs, B)
    we_x = we[0:1, :].T                             # (units, 1)      encoder column for x
    we_a = we[1:, :].T                              # (units, num_pcs)
    be_t = be.T                                     # (units, 1)
    wh_t = jnp.concatenate([wd, wm], axis=1).T      # (2, units)      fused heads
    bh_t = jnp.concatenate([bd, bm], axis=1).T      # (2, 1)

    # Row tile along the batch: multiple of 128 lanes; no jnp.pad pass — the partial
    # tail block is clipped by Pallas on writeback.
    block_rows = max(128, _round_up(block_rows, 128))
    TB = min(block_rows, _round_up(B, 128))
    grid = (pl.cdiv(B, TB),)

    def lane_spec(rows):                            # batch-tiled, lane-dense
        return pl.BlockSpec((rows, TB), lambda i: (0, i))

    def resident_spec(arr):                         # whole array, VMEM-resident
        return pl.BlockSpec(arr.shape, lambda i: (0, 0))

    out_t = pl.pallas_call(
        net_pheno_kernel,
        out_shape=jax.ShapeDtypeStruct((2, B), jnp.float32),
        grid=grid,
        in_specs=[lane_spec(1), lane_spec(num_pcs),
                  resident_spec(we_x), resident_spec(we_a), resident_spec(be_t),
                  resident_spec(wh_t), resident_spec(bh_t)],
        out_specs=lane_spec(2),
        compiler_params=pltpu.CompilerParams(
            dimension_semantics=("parallel",),
            vmem_limit_bytes=32 * 1024 * 1024),
    )(xt, at, we_x, we_a, be_t, wh_t, bh_t)

    # Free XLA slices/transposes to recover the two (B, 1) heads.
    prs = out_t[0:1, :].T
    pheno = out_t[1:2, :].T
    return prs, pheno


def _reference(x, a, params):
    we, be, wd, bd, wm, bm = params
    h = jnp.maximum(jnp.concatenate([x, a], axis=1) @ we + be, 0.0)
    return h @ wd + bd, h @ wm + bm


if __name__ == "__main__":
    num_pcs, units = 4, 32

    key = jax.random.PRNGKey(0)
    k_params, k_x1, k_a1, k_x2, k_a2 = jax.random.split(key, 5)
    params = make_params(k_params, units, num_pcs)

    # Case 1: small batch (single partial tile).
    B1 = 8
    x1 = jax.random.normal(k_x1, (B1, 1), jnp.float32)
    a1 = jax.random.normal(k_a1, (B1, num_pcs), jnp.float32)
    prs1, pheno1 = net_pheno_auto(x1, a1, params)
    jax.block_until_ready((prs1, pheno1))
    prs1_ref, pheno1_ref = _reference(x1, a1, params)
    assert prs1.shape == (B1, 1) and pheno1.shape == (B1, 1)
    assert jnp.allclose(prs1, prs1_ref, atol=1e-4, rtol=1e-4), "prs mismatch (B=8)"
    assert jnp.allclose(pheno1, pheno1_ref, atol=1e-4, rtol=1e-4), "pheno mismatch (B=8)"

    # Case 2: ragged batch exercising the grid (multiple tiles + clipped tail block).
    B2 = 1037
    x2 = jax.random.normal(k_x2, (B2, 1), jnp.float32)
    a2 = jax.random.normal(k_a2, (B2, num_pcs), jnp.float32)
    prs2, pheno2 = net_pheno_auto(x2, a2, params, block_rows=512)
    jax.block_until_ready((prs2, pheno2))
    prs2_ref, pheno2_ref = _reference(x2, a2, params)
    assert prs2.shape == (B2, 1) and pheno2.shape == (B2, 1)
    assert jnp.allclose(prs2, prs2_ref, atol=1e-4, rtol=1e-4), "prs mismatch (B=1037)"
    assert jnp.allclose(pheno2, pheno2_ref, atol=1e-4, rtol=1e-4), "pheno mismatch (B=1037)"

    print("KERNEL_OK")
</pallas_src>

<mosaic_0001>
module attributes {stable_mosaic.version = 11 : i64} {
  func.func @net_pheno_kernel(%arg0: i32, %arg1: memref<1x128xf32, #tpu.memory_space<vmem>>, %arg2: memref<4x128xf32, #tpu.memory_space<vmem>>, %arg3: memref<32x1xf32, #tpu.memory_space<vmem>>, %arg4: memref<32x4xf32, #tpu.memory_space<vmem>>, %arg5: memref<32x1xf32, #tpu.memory_space<vmem>>, %arg6: memref<2x32xf32, #tpu.memory_space<vmem>>, %arg7: memref<2x1xf32, #tpu.memory_space<vmem>>, %arg8: memref<2x128xf32, #tpu.memory_space<vmem>>) attributes {dimension_semantics = [#tpu.dimension_semantics<parallel>], iteration_bounds = array<i64: 1>, scalar_prefetch = 0 : i64, scratch_operands = 0 : i64, tpu.core_type = #tpu.core_type<tc>, window_params = [{transform_indices = @transform_0, window_bounds = array<i64: 1, 128>}, {transform_indices = @transform_1, window_bounds = array<i64: 4, 128>}, {pipeline_mode = #tpu.pipeline_mode<synchronous>, transform_indices = @transform_2, window_bounds = array<i64: 32, 1>}, {pipeline_mode = #tpu.pipeline_mode<synchronous>, transform_indices = @transform_3, window_bounds = array<i64: 32, 4>}, {pipeline_mode = #tpu.pipeline_mode<synchronous>, transform_indices = @transform_4, window_bounds = array<i64: 32, 1>}, {pipeline_mode = #tpu.pipeline_mode<synchronous>, transform_indices = @transform_5, window_bounds = array<i64: 2, 32>}, {pipeline_mode = #tpu.pipeline_mode<synchronous>, transform_indices = @transform_6, window_bounds = array<i64: 2, 1>}, {transform_indices = @transform_7, window_bounds = array<i64: 2, 128>}]} {
    %c0 = arith.constant 0 : index
    %c0_0 = arith.constant 0 : index
    %0 = vector.load %arg1[%c0, %c0_0] : memref<1x128xf32, #tpu.memory_space<vmem>>, vector<1x128xf32>
    %c0_1 = arith.constant 0 : index
    %c0_2 = arith.constant 0 : index
    %1 = vector.load %arg2[%c0_1, %c0_2] : memref<4x128xf32, #tpu.memory_space<vmem>>, vector<4x128xf32>
    %c0_3 = arith.constant 0 : index
    %c0_4 = arith.constant 0 : index
    %2 = vector.load %arg4[%c0_3, %c0_4] : memref<32x4xf32, #tpu.memory_space<vmem>>, vector<32x4xf32>
    %c0_5 = arith.constant 0 : index
    %c0_6 = arith.constant 0 : index
    %3 = vector.load %arg3[%c0_5, %c0_6] : memref<32x1xf32, #tpu.memory_space<vmem>>, vector<32x1xf32>
    %4 = vector.broadcast %3 : vector<32x1xf32> to vector<32x128xf32>
    %5 = vector.broadcast %0 : vector<1x128xf32> to vector<32x128xf32>
    %6 = arith.mulf %4, %5 : vector<32x128xf32>
    %7 = vector.extract_strided_slice %2 {offsets = [0, 0], sizes = [32, 1], strides = [1, 1]} : vector<32x4xf32> to vector<32x1xf32>
    %8 = vector.extract_strided_slice %1 {offsets = [0, 0], sizes = [1, 128], strides = [1, 1]} : vector<4x128xf32> to vector<1x128xf32>
    %9 = vector.broadcast %7 : vector<32x1xf32> to vector<32x128xf32>
    %10 = vector.broadcast %8 : vector<1x128xf32> to vector<32x128xf32>
    %11 = arith.mulf %9, %10 : vector<32x128xf32>
    %12 = arith.addf %6, %11 : vector<32x128xf32>
    %13 = vector.extract_strided_slice %2 {offsets = [0, 1], sizes = [32, 1], strides = [1, 1]} : vector<32x4xf32> to vector<32x1xf32>
    %14 = vector.extract_strided_slice %1 {offsets = [1, 0], sizes = [1, 128], strides = [1, 1]} : vector<4x128xf32> to vector<1x128xf32>
    %15 = vector.broadcast %13 : vector<32x1xf32> to vector<32x128xf32>
    %16 = vector.broadcast %14 : vector<1x128xf32> to vector<32x128xf32>
    %17 = arith.mulf %15, %16 : vector<32x128xf32>
    %18 = arith.addf %12, %17 : vector<32x128xf32>
    %19 = vector.extract_strided_slice %2 {offsets = [0, 2], sizes = [32, 1], strides = [1, 1]} : vector<32x4xf32> to vector<32x1xf32>
    %20 = vector.extract_strided_slice %1 {offsets = [2, 0], sizes = [1, 128], strides = [1, 1]} : vector<4x128xf32> to vector<1x128xf32>
    %21 = vector.broadcast %19 : vector<32x1xf32> to vector<32x128xf32>
    %22 = vector.broadcast %20 : vector<1x128xf32> to vector<32x128xf32>
    %23 = arith.mulf %21, %22 : vector<32x128xf32>
    %24 = arith.addf %18, %23 : vector<32x128xf32>
    %25 = vector.extract_strided_slice %2 {offsets = [0, 3], sizes = [32, 1], strides = [1, 1]} : vector<32x4xf32> to vector<32x1xf32>
    %26 = vector.extract_strided_slice %1 {offsets = [3, 0], sizes = [1, 128], strides = [1, 1]} : vector<4x128xf32> to vector<1x128xf32>
    %27 = vector.broadcast %25 : vector<32x1xf32> to vector<32x128xf32>
    %28 = vector.broadcast %26 : vector<1x128xf32> to vector<32x128xf32>
    %29 = arith.mulf %27, %28 : vector<32x128xf32>
    %30 = arith.addf %24, %29 : vector<32x128xf32>
    %c0_7 = arith.constant 0 : index
    %c0_8 = arith.constant 0 : index
    %31 = vector.load %arg5[%c0_7, %c0_8] : memref<32x1xf32, #tpu.memory_space<vmem>>, vector<32x1xf32>
    %32 = vector.broadcast %31 : vector<32x1xf32> to vector<32x128xf32>
    %33 = arith.addf %30, %32 : vector<32x128xf32>
    %cst = arith.constant 0.000000e+00 : f32
    %34 = vector.broadcast %cst : f32 to vector<32x128xf32>
    %35 = arith.maximumf %33, %34 : vector<32x128xf32>
    %c0_9 = arith.constant 0 : index
    %c0_10 = arith.constant 0 : index
    %36 = vector.load %arg6[%c0_9, %c0_10] : memref<2x32xf32, #tpu.memory_space<vmem>>, vector<2x32xf32>
    %cst_11 = arith.constant dense<0.000000e+00> : vector<2x128xf32>
    %37 = tpu.matmul %36, %35, %cst_11 {dimension_numbers = #tpu.dot_dimension_numbers<[1], [0], [0], [1], [0, 0, 1, 1], [], []>} : vector<2x32xf32>, vector<32x128xf32>, vector<2x128xf32> -> vector<2x128xf32>
    %c0_12 = arith.constant 0 : index
    %c0_13 = arith.constant 0 : index
    %38 = vector.load %arg7[%c0_12, %c0_13] : memref<2x1xf32, #tpu.memory_space<vmem>>, vector<2x1xf32>
    %39 = vector.broadcast %38 : vector<2x1xf32> to vector<2x128xf32>
    %40 = arith.addf %37, %39 : vector<2x128xf32>
    %c0_14 = arith.constant 0 : index
    %c0_15 = arith.constant 0 : index
    %41 = vector.load %arg8[%c0_14, %c0_15] : memref<2x128xf32, #tpu.memory_space<vmem>>, vector<2x128xf32>
    tpu.vector_store %arg8[%c0_14, %c0_15], %40 {strides = array<i32>} : memref<2x128xf32, #tpu.memory_space<vmem>>, vector<2x128xf32>,
    return
  }
  func.func @transform_0(%arg0: i32) -> (i32, i32) {
    %c0_i32 = arith.constant 0 : i32
    %c0_i32_0 = arith.constant 0 : i32
    return %c0_i32, %arg0 : i32, i32
  }
  func.func @transform_1(%arg0: i32) -> (i32, i32) {
    %c0_i32 = arith.constant 0 : i32
    %c0_i32_0 = arith.constant 0 : i32
    return %c0_i32, %arg0 : i32, i32
  }
  func.func @transform_2(%arg0: i32) -> (i32, i32) {
    %c0_i32 = arith.constant 0 : i32
    %c0_i32_0 = arith.constant 0 : i32
    %c0_i32_1 = arith.constant 0 : i32
    return %c0_i32, %c0_i32_0 : i32, i32
  }
  func.func @transform_3(%arg0: i32) -> (i32, i32) {
    %c0_i32 = arith.constant 0 : i32
    %c0_i32_0 = arith.constant 0 : i32
    %c0_i32_1 = arith.constant 0 : i32
    return %c0_i32, %c0_i32_0 : i32, i32
  }
  func.func @transform_4(%arg0: i32) -> (i32, i32) {
    %c0_i32 = arith.constant 0 : i32
    %c0_i32_0 = arith.constant 0 : i32
    %c0_i32_1 = arith.constant 0 : i32
    return %c0_i32, %c0_i32_0 : i32, i32
  }
  func.func @transform_5(%arg0: i32) -> (i32, i32) {
    %c0_i32 = arith.constant 0 : i32
    %c0_i32_0 = arith.constant 0 : i32
    %c0_i32_1 = arith.constant 0 : i32
    return %c0_i32, %c0_i32_0 : i32, i32
  }
  func.func @transform_6(%arg0: i32) -> (i32, i32) {
    %c0_i32 = arith.constant 0 : i32
    %c0_i32_0 = arith.constant 0 : i32
    %c0_i32_1 = arith.constant 0 : i32
    return %c0_i32, %c0_i32_0 : i32, i32
  }
  func.func @transform_7(%arg0: i32) -> (i32, i32) {
    %c0_i32 = arith.constant 0 : i32
    %c0_i32_0 = arith.constant 0 : i32
    return %c0_i32, %arg0 : i32, i32
  }
}

</mosaic_0001>

<bundles_post_ra>
// kernel: tpu_custom_call.1
= control target key start
LH: loop header
LB: loop body
LE: loop exit
PB: predicated region body
PF: predicated region fallthrough
CT: control target
= control target key end

     0   :  { %v381_v2 = vmov 0   ;;  %s491_s0 = inlined_call_operand.vmem [shape: f32[1,8], index: 0, kind: input, shape index: {}]   ;;  %s492_s1 = inlined_call_operand.vmem [shape: f32[4,8], index: 1, kind: input, shape index: {}]   ;;  %s493_s2 = inlined_call_operand.vmem [shape: f32[32,1], index: 2, kind: input, shape index: {}]   ;;  %s494_s3 = inlined_call_operand.vmem [shape: f32[32,4], index: 3, kind: input, shape index: {}]   ;;  %s495_s4 = inlined_call_operand.vmem [shape: f32[32,1], index: 4, kind: input, shape index: {}]   ;;  %s496_s5 = inlined_call_operand.vmem [shape: f32[2,32], index: 5, kind: input, shape index: {}]   ;;  %s497_s6 = inlined_call_operand.vmem [shape: f32[2,1], index: 6, kind: input, shape index: {}]   ;;  %s498_s7 = inlined_call_operand.hbm [shape: f32[2,8], index: 7, kind: output, shape index: {}]  }
   0x1   :  { %v33_v0 = vld [vmem:[%s493_s2] sm:$0xff]  ;;  %344 = vset.pattern.permute.xlu1 %v381_v2  ;;  %343 = vset.pattern.permute.xlu0 %v381_v2  ;;  %v34_v3 = vld [vmem:[%s493_s2 + $0x8] sm:$0xff] }
   0x2   :  { %v29_v1 = vld [vmem:[%s494_s3] sm:$0xff]  ;;  %39 = vperm.xlu0 %343, %v33_v0   ;;  %v30_v4 = vld [vmem:[%s494_s3 + $0x8] sm:$0xff] }
   0x3   :  { %69 = vperm.xlu1 %344, %v29_v1  }
   0x4   :  { %12 = vsyncpa [#allocation3], 0  ;;  %v36_v5 = vld [vmem:[%s493_s2 + $0x18] sm:$0xff]  ;;  %v382_v6 = vmov 1   ;;  %v35_v7 = vld [vmem:[%s493_s2 + $0x10] sm:$0xff]  ;;  %v383_v10 = vmov 2   ;;  %v87_v29 = vlaneseq }
   0x5   :  { %v32_v8 = vld [vmem:[%s494_s3 + $0x18] sm:$0xff]  ;;  %v31_v9 = vld [vmem:[%s494_s3 + $0x10] sm:$0xff]  ;;  %v384_v11 = vmov 3   ;;  %v183_v13 = vld [vmem:[%s495_s4] sm:$0xff]  ;;  %v385_v17 = vmov 0.0|0.0   ;;  %vm386_vm0 = vmmov 0  }
   0x6   :  { %44 = vperm.xlu0 %343, %v34_v3   ;;  %v185_v12 = vld [vmem:[%s495_s4 + $0x10] sm:$0xff]  ;;  %v184_v14 = vld [vmem:[%s495_s4 + $0x8] sm:$0xff]  ;;  %v186_v15 = vld [vmem:[%s495_s4 + $0x18] sm:$0xff]  ;;  %329 = vmatprep.subr.bf16.mxu0 %v385_v17  ;;  %v387_v18 = vmov 0.0   ;;  %v88_v31 = vshrl.u32 %v87_v29, 7  ;;  %vm222_vm1 = vcmask 261120  }
   0x7   :  { %74 = vperm.xlu1 %344, %v30_v4   ;;  %v216_v16 = vld [vmem:[%s497_s6] sm:$0x3]  ;;  %326 = vmatprep.mubr.msk.f32.mxu0 %vm386_vm0, %v387_v18  ;;  %s388_s27 = smov [#allocation2]  }
   0x8   :  { %v89_v34 = vsub.s32 0, %v88_v31  ;;  %v28_v35 = vld [vmem:[%s492_s1] sm:$0xf]  ;;  %v117_v39 = vsub.s32 1, %v88_v31  ;;  %v145_v41 = vsub.s32 2, %v88_v31  ;;  %v173_v42 = vsub.s32 3, %v88_v31 }
   0x9   :  { %v311_v40 = vld [vmem:[%s491_s0] ss:$0 sm:$0xff]  ;;  %s303_s28 = sshll.u32 %s388_s27, 4  ;;  %s304_s28 = int_to_ptr.vmem [resolvable:$true] %s303_s28 }
   0xa   :  { %54 = vperm.xlu0 %343, %v36_v5   ;;  %v90_v38 = vrot.slane %v28_v35, %v89_v34  ;;  %v118_v45 = vrot.slane %v28_v35, %v117_v39  ;;  %v146_v50 = vrot.slane %v28_v35, %v145_v41  ;;  %v174_v57 = vrot.slane %v28_v35, %v173_v42  ;;  %s357_s29 = scalar_lea.vmem %s304_s28, 32  ;;  %p362_p1 = scmp.lt.s32.totalorder %s304_s28, %s304_s28 }
   0xb   :  { %345 = vset.pattern.permute.xlu1 %v382_v6  ;;  %p358_p0 = scmp.ne.s32.totalorder %s304_s28, %s357_s29  ;;  %p363_p2 = scmp.lt.s32.totalorder %s357_s29, %s357_s29 }
   0xc   :  { %104 = vperm.xlu1 %345, %v30_v4  }
   0xd   :  { %p364_p3 = por %p363_p2, %p362_p1 }
   0xe   :  { %347 = vset.pattern.permute.xlu0 %v382_v6 }
   0xf   :  { %100 = vperm.xlu0 %347, %v29_v1   ;;  %p365_p4 = pnand %p364_p3, %p358_p0 }
  0x10   :  { %346 = vset.pattern.permute.xlu1 %v381_v2 }
  0x11   :  { %49 = vperm.xlu1 %346, %v35_v7  }
  0x13   :  { %112 = vperm.xlu0 %347, %v32_v8  }
  0x15   :  { %79 = vperm.xlu1 %346, %v31_v9  }
  0x17   :  { %350 = vset.pattern.permute.xlu0 %v383_v10 }
  0x18   :  { %128 = vperm.xlu0 %350, %v29_v1  }
  0x19   :  { %84 = vperm.xlu1 %346, %v32_v8  }
  0x1c   :  { %136 = vperm.xlu0 %350, %v31_v9  }
  0x1d   :  { %348 = vset.pattern.permute.xlu1 %v383_v10 }
  0x1e   :  { %132 = vperm.xlu1 %348, %v30_v4  }
  0x20   :  { %354 = vset.pattern.permute.xlu0 %v384_v11 }
  0x21   :  { %168 = vperm.xlu0 %354, %v32_v8  }
  0x22   :  { %349 = vset.pattern.permute.xlu1 %v382_v6 }
  0x23   :  { %108 = vperm.xlu1 %349, %v31_v9  }
  0x25   :  { %356 = vset.pattern.permute.xlu0 %v381_v2 }
  0x26   :  { %199 = vperm.xlu0 %356, %v185_v12  }
  0x27   :  { %351 = vset.pattern.permute.xlu1 %v384_v11 }
  0x28   :  { %156 = vperm.xlu1 %351, %v29_v1  }
  0x2c   :  { %160 = vperm.xlu1 %351, %v30_v4  }
  0x30   :  { %352 = vset.pattern.permute.xlu1 %v383_v10 }
  0x31   :  { %140 = vperm.xlu1 %352, %v32_v8  }
  0x35   :  { %353 = vset.pattern.permute.xlu1 %v384_v11 }
  0x36   :  { %164 = vperm.xlu1 %353, %v31_v9  }
  0x3a   :  { %355 = vset.pattern.permute.xlu1 %v381_v2 }
  0x3b   :  { %189 = vperm.xlu1 %355, %v183_v13  }
  0x3f   :  { %194 = vperm.xlu1 %355, %v184_v14  }
  0x43   :  { %204 = vperm.xlu1 %355, %v186_v15  }
  0x47   :  { %219 = vperm.xlu1 %355, %v216_v16  }
  0x81   :  { %v40_v23 = vpop.permute.xlu0 %39 }
  0x82   :  { %v70_v19 = vpop.permute.xlu1 %69  ;;  %v63_v43 = vmul.f32 %v311_v40, %v40_v23 }
  0x83   :  { %v91_v44 = vmul.f32 %v90_v38, %v70_v19 }
  0x85   :  { %v45_v25 = vpop.permute.xlu0 %44  ;;  %v95_v58 = vadd.f32 %v91_v44, %v63_v43 }
  0x86   :  { %v75_v20 = vpop.permute.xlu1 %74  ;;  %v64_v48 = vmul.f32 %v311_v40, %v45_v25 }
  0x87   :  { %v92_v51 = vmul.f32 %v90_v38, %v75_v20 }
  0x89   :  { %v55_v28 = vpop.permute.xlu0 %54  ;;  %v96_v0 = vadd.f32 %v92_v51, %v64_v48 }
  0x8a   :  { %v66_v52 = vmul.f32 %v311_v40, %v55_v28 }
  0x8b   :  { %v105_v21 = vpop.permute.xlu1 %104 }
  0x8c   :  { %v120_v59 = vmul.f32 %v118_v45, %v105_v21 }
  0x8e   :  { %v101_v32 = vpop.permute.xlu0 %100  ;;  %v124_v8 = vadd.f32 %v120_v59, %v96_v0 }
  0x8f   :  { %v119_v53 = vmul.f32 %v118_v45, %v101_v32 }
  0x90   :  { %v50_v22 = vpop.permute.xlu1 %49 }
  0x91   :  { %v65_v55 = vmul.f32 %v311_v40, %v50_v22  ;;  %v123_v1 = vadd.f32 %v119_v53, %v95_v58 }
  0x92   :  { %v113_v36 = vpop.permute.xlu0 %112 }
  0x93   :  { %v122_v2 = vmul.f32 %v118_v45, %v113_v36 }
  0x94   :  { %v80_v24 = vpop.permute.xlu1 %79 }
  0x95   :  { %v93_v49 = vmul.f32 %v90_v38, %v80_v24 }
  0x97   :  { %v129_v46 = vpop.permute.xlu0 %128  ;;  %v97_v61 = vadd.f32 %v93_v49, %v65_v55 }
  0x98   :  { %v85_v26 = vpop.permute.xlu1 %84  ;;  %v147_v62 = vmul.f32 %v146_v50, %v129_v46 }
  0x99   :  { %v94_v54 = vmul.f32 %v90_v38, %v85_v26  ;;  %v215_v38 = vld [vmem:[%s496_s5] sm:$0x3] }
  0x9a   :  { %v151_v9 = vadd.f32 %v147_v62, %v123_v1 }
  0x9b   :  { %v137_v60 = vpop.permute.xlu0 %136  ;;  %v98_v3 = vadd.f32 %v94_v54, %v66_v52 }
  0x9c   :  { %v149_v6 = vmul.f32 %v146_v50, %v137_v60 }
  0x9d   :  { %v133_v27 = vpop.permute.xlu1 %132  ;;  %v126_v18 = vadd.f32 %v122_v2, %v98_v3 }
  0x9e   :  { %v148_v4 = vmul.f32 %v146_v50, %v133_v27 }
  0xa0   :  { %v169_v12 = vpop.permute.xlu0 %168  ;;  %v152_v15 = vadd.f32 %v148_v4, %v124_v8 }
  0xa1   :  { %v178_v20 = vmul.f32 %v174_v57, %v169_v12 }
  0xa2   :  { %v109_v30 = vpop.permute.xlu1 %108 }
  0xa3   :  { %v121_v56 = vmul.f32 %v118_v45, %v109_v30 }
  0xa5   :  { %v125_v5 = vadd.f32 %v121_v56, %v97_v61  ;;  %v200_v25 = vpop.permute.xlu0 %199 }
  0xa7   :  { %v157_v33 = vpop.permute.xlu1 %156  ;;  %v153_v16 = vadd.f32 %v149_v6, %v125_v5 }
  0xa8   :  { %v175_v7 = vmul.f32 %v174_v57, %v157_v33 }
  0xaa   :  { %v179_v19 = vadd.f32 %v175_v7, %v151_v9 }
  0xab   :  { %v161_v37 = vpop.permute.xlu1 %160 }
  0xac   :  { %v176_v10 = vmul.f32 %v174_v57, %v161_v37 }
  0xae   :  { %v180_v24 = vadd.f32 %v176_v10, %v152_v15 }
  0xb0   :  { %v141_v47 = vpop.permute.xlu1 %140 }
  0xb1   :  { %v150_v11 = vmul.f32 %v146_v50, %v141_v47 }
  0xb3   :  { %v154_v21 = vadd.f32 %v150_v11, %v126_v18 }
  0xb5   :  { %v165_v63 = vpop.permute.xlu1 %164  ;;  %v182_v31 = vadd.f32 %v178_v20, %v154_v21 }
  0xb6   :  { %v177_v13 = vmul.f32 %v174_v57, %v165_v63 }
  0xb8   :  { %v181_v22 = vadd.f32 %v177_v13, %v153_v16 }
  0xba   :  { %v190_v14 = vpop.permute.xlu1 %189  ;;  %v209_v28 = vadd.f32 %v200_v25, %v181_v22 }
  0xbb   :  { %v207_v23 = vadd.f32 %v190_v14, %v179_v19 }
  0xbc   :  { %v213_v35 = vmax.f32 %v209_v28, 0.0 }
  0xbd   :  { %v211_v29 = vmax.f32 %v207_v23, 0.0 }
  0xbe   :  { %v195_v26 = vpop.permute.xlu1 %194 }
  0xbf   :  { %v208_v27 = vadd.f32 %v195_v26, %v180_v24 }
  0xc1   :  { %v212_v30 = vmax.f32 %v208_v27, 0.0 }
  0xc2   :  { %v205_v32 = vpop.permute.xlu1 %204 }
  0xc3   :  { %v210_v33 = vadd.f32 %v205_v32, %v182_v31  ;;  %v330_v34 = vpack.c.bf16 %v212_v30, %v211_v29 }
  0xc5   :  { %v214_v36 = vmax.f32 %v210_v33, 0.0  ;;  %331 = vmatpush3.bf16.msra.mxu0 %v330_v34 }
  0xc6   :  { %332 = vmatprep.subr.bf16.mxu0 %v385_v17  ;;  %v220_v39 = vpop.permute.xlu1 %219 }
  0xc7   :  { %v333_v37 = vpack.c.bf16 %v214_v36, %v213_v35 }
  0xc9   :  { %334 = vmatpush3.bf16.msra.mxu0 %v333_v37 }
  0xcc   :  { %327 = vmatmul.mubr.msk.f32.vlgmr.msra.gmra.mrb[0].mxu0 %vm222_vm1, %v215_v38 }
 0x19f   :  { %v292_v40 = vpop.f32.mrb[0].mxu0 }
 0x1a0   :  { %v293_v41 = vadd.f32 %v292_v40, %v220_v39  ;;  %v328_v42 = vpop.f32.mrb[1].mxu0 }
 0x1a2   :  { %296 = vst [vmem:[#allocation2] sm:$0x3] %v293_v41 }
 0x1a3   :  { %368 = shalt.err (!%p365_p4)
}
 0x1a4   :  { %s369_s5 = scalar_lea.hbm %s498_s7, 32 }
 0x1a5   :  { %p370_p5 = scmp.ne.s32.totalorder %s498_s7, %s369_s5  ;;  %p373_p6 = scmp.lt.u32.totalorder %s369_s5, %s498_s7 }
 0x1a7   :  { %p375_p7 = pnand %p373_p6, %p370_p5 }
 0x1a9   :  { %378 = shalt.err (!%p375_p7)
}
 0x1aa   :  { %306 = dma.vmem_to_hbm [thread:$0]  %s304_s28, 32, %s498_s7, [#allocation3]  }
 0x1ab   :  { %379 = dma.done.wait [#allocation3], 32  }
 0x1ac   :  { %380 = vsyncadd [#allocation3], 4294967264 }
 0x1ad   :  { %310 = vsyncpa [#allocation3], 1 }

</bundles_post_ra>
